<compile_context>
chip_gen: v6e
topology: v6e:2x2x1
jax: 0.10.0
libtpu: 0.0.40
codegen_flags: <defaults>
</compile_context>

<pallas_src>
import jax
import jax.numpy as jnp
from jax import lax
from jax.experimental import pallas as pl
from jax.experimental.pallas import tpu as pltpu


def _round_up(x, m):
    return ((x + m - 1) // m) * m


def _make_kernel(tm, tn, n1, n2, needs_mask):
    eps = 1e-07

    def kernel(gt1_ref, gt2_ref, p1_ref, p2t_ref, part_ref):
        j = pl.program_id(1)

        # P = prob_1 @ prob_2^T : contract feature axis on the MXU, f32 accumulation.
        P = lax.dot_general(
            p1_ref[...], p2t_ref[...],
            dimension_numbers=(((1,), (0,)), ((), ())),
            preferred_element_type=jnp.float32,
        )  # (tm, tn)
        # Guard against fp overshoot above 1.0 (would NaN log(1-P+eps)); no-op otherwise.
        P = jnp.minimum(P, 1.0)

        # Masks were folded into the labels as sentinels -> a single compare gives simi.
        sel = gt1_ref[...] == gt2_ref[...]            # (tm,1) vs (1,tn) -> (tm,tn)

        # simi in {0,1}  =>  BCE == -log(select(sel, P, 1-P) + eps): one EUP log / element.
        nl = -jnp.log(jnp.where(sel, P, 1.0 - P) + eps)

        if needs_mask:
            # Tail masking: padded rows/cols contribute exactly 0 (static branch,
            # only compiled in when the shapes required padding).
            i = pl.program_id(0)
            rows = lax.broadcasted_iota(jnp.int32, (tm, tn), 0) + i * tm
            cols = lax.broadcasted_iota(jnp.int32, (tm, tn), 1) + j * tn
            nl = jnp.where((rows < n1) & (cols < n2), nl, 0.0)

        # Output block index depends only on i -> VMEM-resident accumulator across j.
        @pl.when(j == 0)
        def _():
            part_ref[...] = nl

        @pl.when(j > 0)
        def _():
            part_ref[...] += nl

    return kernel


def _select_tiles(n1, n2, c):
    """Large tiles to amortize grid overhead, bounded by a conservative VMEM budget."""
    # i-tile (second-minor dim): multiple of 8.  Keep >=2 i-tiles when n1 is large
    # enough so the "parallel" axis can actually split across v7x's two TensorCores.
    if n1 <= 256:
        tm = _round_up(n1, 8)
    else:
        tm = min(512, _round_up(-(-n1 // 2), 8))
    # j-tile (lane dim): multiple of 128, large by default.
    tn = min(2048, _round_up(n2, 128))

    def vmem_est(tm_, tn_):
        return 4 * (2 * tm_ * tn_        # double-buffered f32 accumulator block
                    + 2 * tm_ * c        # prob_1 tiles (upper bound: f32)
                    + 2 * c * tn_        # prob_2^T tiles
                    + 2 * tm_ * 128      # (tm,1) label tiles (lanes pad to 128)
                    + 2 * 8 * tn_)       # (1,tn) label tiles (sublanes pad to 8)

    budget = 24 * 1024 * 1024            # safe under v7x/v6e 32 MiB scoped VMEM
    while vmem_est(tm, tn) > budget and tn > 128:
        tn = max(128, (tn // 2) // 128 * 128)
    while vmem_est(tm, tn) > budget and tm > 8:
        tm = max(8, _round_up(tm // 2, 8))
    return tm, tn


def pair_loss(gt1, gt2, mask1, mask2, prob_1, prob_2, *, tm=None, tn=None):
    """JAX/Pallas equivalent of Pair_loss.forward. Returns a scalar loss."""
    n1, c = prob_1.shape
    n2, c2 = prob_2.shape
    assert c == c2

    auto_tm, auto_tn = _select_tiles(n1, n2, c)
    tm = auto_tm if tm is None else tm
    tn = auto_tn if tn is None else tn

    n1p = _round_up(n1, tm)
    n2p = _round_up(n2, tn)
    needs_mask = (n1p != n1) or (n2p != n2)

    # Fold masks into the labels: masked/padded entries get sentinels that can never
    # compare equal, so the kernel does a single compare per element.
    m1 = mask1 == 1
    m2 = mask2 == 1
    if jnp.issubdtype(gt1.dtype, jnp.integer) and jnp.issubdtype(gt2.dtype, jnp.integer):
        # Assumes real labels never take the two most-negative int32 values.
        s1 = int(jnp.iinfo(jnp.int32).min)
        s2 = s1 + 1
        gt1_enc = jnp.where(m1, gt1.astype(jnp.int32), jnp.int32(s1))
        gt2_enc = jnp.where(m2, gt2.astype(jnp.int32), jnp.int32(s2))
        pad1, pad2 = s1, s2
    else:
        # NaN compares unequal to everything (including NaN).
        gt1_enc = jnp.where(m1, gt1.astype(jnp.float32), jnp.float32(jnp.nan))
        gt2_enc = jnp.where(m2, gt2.astype(jnp.float32), jnp.float32(jnp.nan))
        pad1 = pad2 = float("nan")

    gt1_2d = jnp.pad(gt1_enc, (0, n1p - n1), constant_values=pad1).reshape(n1p, 1)
    gt2_2d = jnp.pad(gt2_enc, (0, n2p - n2), constant_values=pad2).reshape(1, n2p)

    p1 = jnp.pad(prob_1, ((0, n1p - n1), (0, 0)))
    p2t = jnp.pad(prob_2, ((0, n2p - n2), (0, 0))).T    # (C, N2p) canonical MXU RHS

    grid = (n1p // tm, n2p // tn)
    kernel = _make_kernel(tm, tn, n1, n2, needs_mask)

    cost = pl.CostEstimate(
        flops=2 * n1p * n2p * c,
        transcendentals=n1p * n2p,
        bytes_accessed=4 * (n1p * c + (n1p // tm) * n2p * c + n1p * tn),
    )

    partial = pl.pallas_call(
        kernel,
        out_shape=jax.ShapeDtypeStruct((n1p, tn), jnp.float32),
        grid_spec=pltpu.PrefetchScalarGridSpec(
            num_scalar_prefetch=0,
            grid=grid,
            in_specs=[
                pl.BlockSpec((tm, 1), lambda i, j: (i, 0)),   # gt1 (mask-encoded)
                pl.BlockSpec((1, tn), lambda i, j: (0, j)),   # gt2 (mask-encoded)
                pl.BlockSpec((tm, c), lambda i, j: (i, 0)),   # prob_1  (N1p, C)
                pl.BlockSpec((c, tn), lambda i, j: (0, j)),   # prob_2T (C, N2p)
            ],
            # Same output block index across j -> VMEM-resident per-i-tile accumulator.
            out_specs=pl.BlockSpec((tm, tn), lambda i, j: (i, 0)),
        ),
        compiler_params=pltpu.CompilerParams(
            dimension_semantics=("parallel", "arbitrary"),
            vmem_limit_bytes=32 * 1024 * 1024,
        ),
        cost_estimate=cost,
    )(gt1_2d, gt2_2d, p1, p2t)

    # Final tiny reduction + mean in the wrapper (padded contributions are exactly 0).
    return jnp.sum(partial) / jnp.float32(n1 * n2)


def _reference(gt1, gt2, mask1, mask2, prob_1, prob_2):
    """Pure-JAX reference matching the PyTorch module."""
    P = prob_1 @ prob_2.T  # (N1, N2)
    simi = ((gt1[:, None] == gt2[None, :])
            & (mask1[:, None] == 1.0)
            & (mask2[None, :] == 1.0)).astype(jnp.float32)
    eps = 1e-07
    loss = -(simi * jnp.log(P + eps) + (1.0 - simi) * jnp.log(1.0 - P + eps))
    return jnp.mean(loss)


if __name__ == "__main__":
    key = jax.random.PRNGKey(0)
    k1, k2, k3, k4, k5, k6 = jax.random.split(key, 6)

    N1, N2, C = 16, 16, 32
    gt1 = jax.random.randint(k1, (N1,), 0, 4).astype(jnp.int32)
    gt2 = jax.random.randint(k2, (N2,), 0, 4).astype(jnp.int32)
    mask1 = jax.random.bernoulli(k3, 0.7, (N1,)).astype(jnp.float32)
    mask2 = jax.random.bernoulli(k4, 0.7, (N2,)).astype(jnp.float32)
    prob_1 = jax.nn.softmax(jax.random.normal(k5, (N1, C), jnp.float32), axis=-1)
    prob_2 = jax.nn.softmax(jax.random.normal(k6, (N2, C), jnp.float32), axis=-1)

    loss = jax.block_until_ready(
        pair_loss(gt1, gt2, mask1, mask2, prob_1, prob_2))
    ref = _reference(gt1, gt2, mask1, mask2, prob_1, prob_2)

    assert jnp.isfinite(loss), "non-finite loss"
    assert jnp.abs(loss - ref) < 1e-5, (loss, ref)
    print("KERNEL_OK")
</pallas_src>

<mosaic_0001>
module attributes {stable_mosaic.version = 11 : i64} {
  func.func @kernel(%arg0: i32, %arg1: i32, %arg2: memref<16x1xi32, #tpu.memory_space<vmem>>, %arg3: memref<1x128xi32, #tpu.memory_space<vmem>>, %arg4: memref<16x32xf32, #tpu.memory_space<vmem>>, %arg5: memref<32x128xf32, #tpu.memory_space<vmem>>, %arg6: memref<16x128xf32, #tpu.memory_space<vmem>>) attributes {dimension_semantics = [#tpu.dimension_semantics<parallel>, #tpu.dimension_semantics<arbitrary>], iteration_bounds = array<i64: 1, 1>, scalar_prefetch = 0 : i64, scratch_operands = 0 : i64, tpu.core_type = #tpu.core_type<tc>, window_params = [{transform_indices = @transform_0, window_bounds = array<i64: 16, 1>}, {transform_indices = @transform_1, window_bounds = array<i64: 1, 128>}, {transform_indices = @transform_2, window_bounds = array<i64: 16, 32>}, {transform_indices = @transform_3, window_bounds = array<i64: 32, 128>}, {transform_indices = @transform_4, window_bounds = array<i64: 16, 128>}]} {
    %c0 = arith.constant 0 : index
    %c0_0 = arith.constant 0 : index
    %0 = vector.load %arg4[%c0, %c0_0] : memref<16x32xf32, #tpu.memory_space<vmem>>, vector<16x32xf32>
    %c0_1 = arith.constant 0 : index
    %c0_2 = arith.constant 0 : index
    %1 = vector.load %arg5[%c0_1, %c0_2] : memref<32x128xf32, #tpu.memory_space<vmem>>, vector<32x128xf32>
    %cst = arith.constant dense<0.000000e+00> : vector<16x128xf32>
    %2 = tpu.matmul %0, %1, %cst {dimension_numbers = #tpu.dot_dimension_numbers<[1], [0], [0], [1], [0, 0, 1, 1], [], []>} : vector<16x32xf32>, vector<32x128xf32>, vector<16x128xf32> -> vector<16x128xf32>
    %cst_3 = arith.constant 1.000000e+00 : f32
    %3 = vector.broadcast %cst_3 : f32 to vector<16x128xf32>
    %4 = arith.minimumf %2, %3 : vector<16x128xf32>
    %c0_4 = arith.constant 0 : index
    %c0_5 = arith.constant 0 : index
    %5 = vector.load %arg2[%c0_4, %c0_5] : memref<16x1xi32, #tpu.memory_space<vmem>>, vector<16x1xi32>
    %c0_6 = arith.constant 0 : index
    %c0_7 = arith.constant 0 : index
    %6 = vector.load %arg3[%c0_6, %c0_7] : memref<1x128xi32, #tpu.memory_space<vmem>>, vector<1x128xi32>
    %7 = vector.broadcast %5 : vector<16x1xi32> to vector<16x128xi32>
    %8 = vector.broadcast %6 : vector<1x128xi32> to vector<16x128xi32>
    %9 = arith.cmpi eq, %7, %8 : vector<16x128xi32>
    %cst_8 = arith.constant 1.000000e+00 : f32
    %10 = vector.broadcast %cst_8 : f32 to vector<16x128xf32>
    %11 = arith.subf %10, %4 : vector<16x128xf32>
    %12 = arith.select %9, %4, %11 : vector<16x128xi1>, vector<16x128xf32>
    %cst_9 = arith.constant 1.000000e-07 : f32
    %13 = vector.broadcast %cst_9 : f32 to vector<16x128xf32>
    %14 = arith.addf %12, %13 : vector<16x128xf32>
    %15 = math.log %14 : vector<16x128xf32>
    %cst_10 = arith.constant 0.000000e+00 : f32
    %16 = vector.broadcast %cst_10 : f32 to vector<16x128xf32>
    %17 = arith.subf %16, %15 : vector<16x128xf32>
    %18 = tpu.iota {dimensions = array<i32: 0>} : vector<16x128xi32>
    %c16_i32 = arith.constant 16 : i32
    %19 = arith.muli %arg0, %c16_i32 : i32
    %20 = vector.broadcast %19 : i32 to vector<16x128xi32>
    %21 = arith.addi %18, %20 : vector<16x128xi32>
    %22 = tpu.iota {dimensions = array<i32: 1>} : vector<16x128xi32>
    %c128_i32 = arith.constant 128 : i32
    %23 = arith.muli %arg1, %c128_i32 : i32
    %24 = vector.broadcast %23 : i32 to vector<16x128xi32>
    %25 = arith.addi %22, %24 : vector<16x128xi32>
    %c16_i32_11 = arith.constant 16 : i32
    %26 = vector.broadcast %c16_i32_11 : i32 to vector<16x128xi32>
    %27 = arith.cmpi slt, %21, %26 : vector<16x128xi32>
    %c16_i32_12 = arith.constant 16 : i32
    %28 = vector.broadcast %c16_i32_12 : i32 to vector<16x128xi32>
    %29 = arith.cmpi slt, %25, %28 : vector<16x128xi32>
    %30 = arith.andi %27, %29 : vector<16x128xi1>
    %cst_13 = arith.constant 0.000000e+00 : f32
    %31 = vector.broadcast %cst_13 : f32 to vector<16x128xf32>
    %32 = arith.select %30, %17, %31 : vector<16x128xi1>, vector<16x128xf32>
    %c0_i32 = arith.constant 0 : i32
    %33 = arith.cmpi eq, %arg1, %c0_i32 : i32
    %34 = arith.extui %33 : i1 to i32
    %c0_i32_14 = arith.constant 0 : i32
    %35 = arith.cmpi ne, %34, %c0_i32_14 : i32
    scf.if %35 {
      %c0_17 = arith.constant 0 : index
      %c0_18 = arith.constant 0 : index
      %39 = vector.load %arg6[%c0_17, %c0_18] : memref<16x128xf32, #tpu.memory_space<vmem>>, vector<16x128xf32>
      tpu.vector_store %arg6[%c0_17, %c0_18], %32 {strides = array<i32>} : memref<16x128xf32, #tpu.memory_space<vmem>>, vector<16x128xf32>,
    } else {
    }
    %c0_i32_15 = arith.constant 0 : i32
    %36 = arith.cmpi sgt, %arg1, %c0_i32_15 : i32
    %37 = arith.extui %36 : i1 to i32
    %c0_i32_16 = arith.constant 0 : i32
    %38 = arith.cmpi ne, %37, %c0_i32_16 : i32
    scf.if %38 {
      %c0_17 = arith.constant 0 : index
      %c0_18 = arith.constant 0 : index
      %39 = vector.load %arg6[%c0_17, %c0_18] : memref<16x128xf32, #tpu.memory_space<vmem>>, vector<16x128xf32>
      %40 = arith.addf %39, %32 : vector<16x128xf32>
      %c0_19 = arith.constant 0 : index
      %c0_20 = arith.constant 0 : index
      %41 = vector.load %arg6[%c0_19, %c0_20] : memref<16x128xf32, #tpu.memory_space<vmem>>, vector<16x128xf32>
      tpu.vector_store %arg6[%c0_19, %c0_20], %40 {strides = array<i32>} : memref<16x128xf32, #tpu.memory_space<vmem>>, vector<16x128xf32>,
    } else {
    }
    return
  }
  func.func @transform_0(%arg0: i32, %arg1: i32) -> (i32, i32) {
    %c0_i32 = arith.constant 0 : i32
    %c0_i32_0 = arith.constant 0 : i32
    return %arg0, %c0_i32 : i32, i32
  }
  func.func @transform_1(%arg0: i32, %arg1: i32) -> (i32, i32) {
    %c0_i32 = arith.constant 0 : i32
    %c0_i32_0 = arith.constant 0 : i32
    return %c0_i32, %arg1 : i32, i32
  }
  func.func @transform_2(%arg0: i32, %arg1: i32) -> (i32, i32) {
    %c0_i32 = arith.constant 0 : i32
    %c0_i32_0 = arith.constant 0 : i32
    return %arg0, %c0_i32 : i32, i32
  }
  func.func @transform_3(%arg0: i32, %arg1: i32) -> (i32, i32) {
    %c0_i32 = arith.constant 0 : i32
    %c0_i32_0 = arith.constant 0 : i32
    return %c0_i32, %arg1 : i32, i32
  }
  func.func @transform_4(%arg0: i32, %arg1: i32) -> (i32, i32) {
    %c0_i32 = arith.constant 0 : i32
    %c0_i32_0 = arith.constant 0 : i32
    return %arg0, %c0_i32 : i32, i32
  }
}

</mosaic_0001>

<bundles_post_ra>
// kernel: tpu_custom_call.1
= control target key start
LH: loop header
LB: loop body
LE: loop exit
PB: predicated region body
PF: predicated region fallthrough
CT: control target
= control target key end

     0   :  { %9 = vsyncpa [#allocation3], 0  ;;  %s334_s0 = inlined_call_operand.vmem [shape: s32[16,1], index: 0, kind: input, shape index: {}]   ;;  %s335_s1 = inlined_call_operand.vmem [shape: s32[1,128], index: 1, kind: input, shape index: {}]   ;;  %s336_s2 = inlined_call_operand.vmem [shape: f32[16,32], index: 2, kind: input, shape index: {}]   ;;  %s337_s3 = inlined_call_operand.hbm [shape: f32[32,128], index: 3, kind: input, shape index: {}]   ;;  %s338_s4 = inlined_call_operand.hbm [shape: f32[16,128], index: 4, kind: output, shape index: {}]  }
   0x1   :  { %10 = vsyncpa [#allocation4], 0  ;;  %s275_s15 = smov [#allocation2]  }
   0x2   :  { %s22_s16 = sshll.u32 %s275_s15, 4  ;;  %s23_s16 = int_to_ptr.vmem [resolvable:$true] %s22_s16 }
   0x3   :  { %s239_s17 = scalar_lea.vmem %s23_s16, 512  ;;  %p244_p1 = scmp.lt.s32.totalorder %s23_s16, %s23_s16 }
   0x4   :  { %p240_p0 = scmp.ne.s32.totalorder %s23_s16, %s239_s17  ;;  %p245_p2 = scmp.lt.s32.totalorder %s239_s17, %s239_s17 }
   0x6   :  { %p246_p3 = por %p245_p2, %p244_p1 }
   0x8   :  { %p247_p4 = pnand %p246_p3, %p240_p0 }
   0xa   :  { %250 = shalt.err (!%p247_p4)
}
   0xb   :  { %s276_s18 = smov 128   ;;  %s277_s19 = smov 8  }
   0xc   :  { %28 = dma.hbm_to_vmem [thread:$0]  %s337_s3, 512, %s23_s16, [#allocation3], %s276_s18, %s276_s18, %s277_s19  }
   0xd   :  { %271 = dma.done.wait [#allocation3], 512  }
   0xe   :  { %272 = vsyncadd [#allocation3], 4294966784  ;;  %v278_v0 = vmov 0   ;;  %vm38_vm0 = vcmask 261120   ;;  %v37_v1 = vld [vmem:[#allocation2 + $0x18] sm:$0xff]  ;;  %v36_v2 = vld [vmem:[#allocation2 + $0x10] sm:$0xff]  ;;  %v156_v22 = vlaneseq }
   0xf   :  { %226 = vset.pattern.permute.xlu0 %v278_v0  ;;  %210 = vmatprep.subr.mxu0 %v37_v1  ;;  %v32_v3 = vld [vmem:[%s336_s2] sm:$0xff]  ;;  %v35_v4 = vld [vmem:[#allocation2 + $0x8] sm:$0xff]  ;;  %v34_v6 = vld [vmem:[#allocation2] sm:$0xff] }
  0x10   :  { %211 = vmatpush3.msra.mxu0 %v37_v1  ;;  %218 = vmatprep.mubr.msk.f32.mxu0 %vm38_vm0, %v32_v3  ;;  %v122_v5 = vld [vmem:[%s334_s0] sm:$0xff]  ;;  %v123_v7 = vld [vmem:[%s334_s0 + $0x8] sm:$0xff]  ;;  %v157_v23 = vand.u32 127, %v156_v22  ;;  %s279_s0 = smov [#allocation5]  }
  0x11   :  { %212 = vmatprep.subr.mxu0 %v36_v2  ;;  %126 = vperm.xlu0 %226, %v122_v5   ;;  %v33_v8 = vld [vmem:[%s336_s2 + $0x8] sm:$0xff]  ;;  %v203_v11 = vld [vmem:[%s335_s1] ss:$0 sm:$0xff]  ;;  %s189_s1 = sshll.u32 %s279_s0, 4  ;;  %s190_s1 = int_to_ptr.vmem [resolvable:$true] %s189_s1 }
  0x12   :  { %213 = vmatpush3.msra.mxu0 %v36_v2  ;;  %vm163_vm3 = vcmp.lt.s32.totalorder %v157_v23, 16  ;;  %s251_s2 = scalar_lea.vmem %s190_s1, 256  ;;  %p256_p6 = scmp.lt.s32.totalorder %s190_s1, %s190_s1 }
  0x13   :  { %214 = vmatprep.subr.mxu0 %v35_v4  ;;  %p252_p5 = scmp.ne.s32.totalorder %s190_s1, %s251_s2  ;;  %p257_p7 = scmp.lt.s32.totalorder %s251_s2, %s251_s2 }
  0x14   :  { %215 = vmatpush3.msra.mxu0 %v35_v4 }
  0x15   :  { %216 = vmatprep.subr.mxu0 %v34_v6  ;;  %129 = vperm.xlu0 %226, %v123_v7   ;;  %p258_p8 = por %p257_p7, %p256_p6 }
  0x16   :  { %217 = vmatpush3.msra.mxu0 %v34_v6 }
  0x17   :  { %219 = vmatmul.mubr.msk.f32.vlgmr.msra.gmra.mxu0 %vm38_vm0, %v33_v8  ;;  %p259_p9 = pnand %p258_p8, %p252_p5 }
  0x8c   :  { %v127_v9 = vpop.permute.xlu0 %126 }
  0x8d   :  { %vm135_vm2 = vcmp.eq.s32.totalorder %v127_v9, %v203_v11 }
  0x90   :  { %v130_v13 = vpop.permute.xlu0 %129 }
  0x91   :  { %vm136_vm1 = vcmp.eq.s32.totalorder %v130_v13, %v203_v11 }
  0xd7   :  { %v220_v10 = vpop.f32.mrf.mxu0 }
  0xd8   :  { %v121_v12 = vmin.f32 %v220_v10, 1.0 }
  0xd9   :  { %v111_v14 = vpop.f32.mrf.mxu0 }
  0xda   :  { %v138_v15 = vsub.f32 1.0, %v121_v12  ;;  %v120_v16 = vmin.f32 %v111_v14, 1.0 }
  0xdc   :  { %v140_v17 = vsel %vm136_vm1, %v121_v12, %v138_v15  ;;  %v137_v18 = vsub.f32 1.0, %v120_v16 }
  0xdd   :  { %v142_v19 = vadd.f32 1e-07, %v140_v17 }
  0xde   :  { %v139_v20 = vsel %vm135_vm2, %v120_v16, %v137_v18 }
  0xdf   :  { %227 = vlog2.f32 %v142_v19  ;;  %v141_v21 = vadd.f32 1e-07, %v139_v20 }
  0xe1   :  { %229 = vlog2.f32 %v141_v21 }
  0xec   :  { %v228_v24 = vpop.eup %227 }
  0xed   :  { %v146_v25 = vmul.f32 0.6931472, %v228_v24 }
  0xee   :  { %v230_v26 = vpop.eup %229 }
  0xef   :  { %v144_v27 = vmul.f32 0.6931472, %v230_v26  ;;  %v148_v28 = vsub.f32 0.0, %v146_v25 }
  0xf1   :  { %v147_v29 = vsub.f32 0.0, %v144_v27  ;;  %v167_v30 = vsel %vm163_vm3, %v148_v28, 0.0 }
  0xf2   :  { %173 = vst [vmem:[#allocation5 + $0x8] sm:$0xff] %v167_v30 }
  0xf3   :  { %v166_v31 = vsel %vm163_vm3, %v147_v29, 0.0 }
  0xf4   :  { %172 = vst [vmem:[#allocation5] sm:$0xff] %v166_v31 }
  0xf5   :  { %262 = shalt.err (!%p259_p9)
}
  0xf6   :  { %195 = dma.vmem_to_hbm [thread:$0]  %s190_s1, 256, %s338_s4, [#allocation4], %s276_s18, %s276_s18, %s277_s19  }
  0xf7   :  { %273 = dma.done.wait [#allocation4], 256  }
  0xf8   :  { %274 = vsyncadd [#allocation4], 4294967040 }
  0xf9   :  { %199 = vsyncpa [#allocation3], 1 }
  0xfa   :  { %200 = vsyncpa [#allocation4], 1 }

</bundles_post_ra>
